<compile_context>
chip_gen: v6e
topology: v6e:2x2x1
jax: 0.10.0
libtpu: 0.0.40
codegen_flags: <defaults>
</compile_context>

<pallas_src>
import functools

import jax
import jax.numpy as jnp
from jax.experimental import pallas as pl
from jax.experimental.pallas import tpu as pltpu

_MIB = 1024 * 1024


def _round_up(x, m):
    return (x + m - 1) // m * m


def _cdiv(a, b):
    return (a + b - 1) // b


def _vmem_capacity_bytes(default=64 * _MIB):
    # Per-chip VMEM capacity (128 MiB on v5e/v6e, 64 MiB on v7x).  Conservative
    # fallback if the query is unavailable.
    try:
        info = pltpu.get_tpu_info()
        return int(getattr(info, "vmem_capacity_bytes", default))
    except Exception:
        return default


def _choose_tiles(n, d, itemsize, total_budget):
    """Pick (tile_rows, tile_d) so total VMEM (inputs x2 buffers + f32 temps) fits."""
    padded_d = max(_round_up(d, 128), 128)
    # Per element: 2 inputs x 2 pipeline buffers in native dtype + ~3 f32 temps
    # (casts / diff / squared) for the in-kernel compute.
    bytes_per_row_elem = 4 * itemsize + 12
    per_row_full = padded_d * bytes_per_row_elem

    if per_row_full * 128 <= total_budget:
        # Whole reduction axis fits in one block: no D tiling.
        tile_d = d
        t = (total_budget // per_row_full) // 128 * 128
        t = min(t, 8192)
    else:
        # D too large for even 128 rows: tile the reduction axis instead.
        tile_d = (total_budget // (128 * bytes_per_row_elem)) // 128 * 128
        tile_d = max(tile_d, 128)
        if tile_d >= d:
            tile_d = d
        t = 128

    if t >= n:
        # One block covering all rows (block dim == full array dim is always legal).
        return n, tile_d

    # t < n and t is a multiple of 128.  Prefer an exact divisor of n, but never
    # collapse the tile below max(512, t // 2) -- small tiles cost ~3x roofline.
    # Otherwise keep the budget-sized tile and let Pallas handle the ragged tail.
    min_keep = max(512, t // 2)
    for cand in range(t, min_keep - 1, -128):
        if n % cand == 0:
            return cand, tile_d
    return t, tile_d


def _mse_lastdim_kernel(p_ref, e_ref, o_ref, acc_ref, *,
                        inv_d, d_total, tile_d, mask_tail):
    # p_ref / e_ref: (tile_rows, tile_d) blocks in the *native* input dtype.
    # o_ref:         (1, tile_rows) lane-dense output block (same block across k).
    # acc_ref:       (1, tile_rows) f32 accumulator scratch.
    k = pl.program_id(1)

    @pl.when(k == 0)
    def _init():
        acc_ref[...] = jnp.zeros_like(acc_ref)

    p = p_ref[...].astype(jnp.float32)
    e = e_ref[...].astype(jnp.float32)
    diff = p - e
    sq = diff * diff                                        # (T, Dblk), exact f32

    if mask_tail:
        # Ragged last D tile: zero out columns past the true reduction length.
        col = k * tile_d + jax.lax.broadcasted_iota(jnp.int32, sq.shape, 1)
        sq = jnp.where(col < d_total, sq, 0.0)

    # MXU ones-reduction: produces the per-row sums directly in lane-major (1, T)
    # form (dense output stores), keeps the XLU/VPU store path free.
    ones = jnp.ones((1, sq.shape[1]), jnp.float32)
    part = jax.lax.dot_general(
        ones, sq, (((1,), (1,)), ((), ())),
        preferred_element_type=jnp.float32)                 # (1, T)
    acc_ref[...] += part

    @pl.when(k == pl.num_programs(1) - 1)
    def _finalize():
        o_ref[...] = (acc_ref[...] * inv_d).astype(o_ref.dtype)


def gaussian_log_likelihood(predicted, expected, *, tile_rows=None, tile_d=None):
    """error = mean((predicted - expected)**2, axis=-1), computed in Pallas."""
    predicted = jnp.asarray(predicted)
    expected = jnp.asarray(expected)
    assert predicted.shape == expected.shape

    orig_shape = predicted.shape
    D = orig_shape[-1]
    lead_shape = orig_shape[:-1]
    N = 1
    for s in lead_shape:
        N *= s

    out_dtype = predicted.dtype
    itemsize = jnp.dtype(predicted.dtype).itemsize

    # Native-dtype HBM reads (no wrapper upcast, no wrapper jnp.pad copies).
    p2 = predicted.reshape(N, D)
    e2 = expected.reshape(N, D)

    # Per-chip total VMEM budget (inputs x2 buffers + in-kernel f32 temporaries):
    # ~24 MiB on v5e/v6e (128 MiB physical), ~21 MiB on v7x (64 MiB physical).
    vmem_cap = _vmem_capacity_bytes()
    total_budget = min(24 * _MIB, max(vmem_cap // 3, 12 * _MIB))

    auto_rows, auto_d = _choose_tiles(N, D, itemsize, total_budget)
    if tile_rows is None:
        tile_rows = auto_rows
    else:
        tile_rows = max(1, min(int(tile_rows), N))
    if tile_d is None:
        tile_d = auto_d
    else:
        tile_d = max(1, min(int(tile_d), D))

    n_row_tiles = _cdiv(N, tile_rows)
    n_d_tiles = _cdiv(D, tile_d)
    grid = (n_row_tiles, n_d_tiles)
    out_cols = n_row_tiles * tile_rows
    mask_tail = (n_d_tiles > 1) and (D % tile_d != 0)

    kernel = functools.partial(
        _mse_lastdim_kernel,
        inv_d=1.0 / D, d_total=D, tile_d=tile_d, mask_tail=mask_tail)

    # VMEM estimate that includes the in-kernel f32 temporaries, not just the
    # double-buffered inputs; raise the scoped limit when it matters (v5e default
    # is 16 MiB) while staying well under v7x's 64 MiB physical VMEM.
    blk_d_pad = max(_round_up(tile_d, 128), 128)
    blk_rows_pad = max(_round_up(tile_rows, 8), 8)
    est_total = blk_rows_pad * blk_d_pad * (4 * itemsize + 12)
    cp_kwargs = dict(dimension_semantics=("parallel", "arbitrary"))
    if est_total > 12 * _MIB:
        cp_kwargs["vmem_limit_bytes"] = int(min(est_total + 8 * _MIB, 40 * _MIB))

    out = pl.pallas_call(
        kernel,
        out_shape=jax.ShapeDtypeStruct((1, out_cols), out_dtype),
        grid_spec=pltpu.PrefetchScalarGridSpec(
            num_scalar_prefetch=0,
            grid=grid,
            in_specs=[
                pl.BlockSpec((tile_rows, tile_d), lambda i, k: (i, k)),
                pl.BlockSpec((tile_rows, tile_d), lambda i, k: (i, k)),
            ],
            out_specs=pl.BlockSpec((1, tile_rows), lambda i, k: (0, i)),
            scratch_shapes=[pltpu.VMEM((1, tile_rows), jnp.float32)],
        ),
        compiler_params=pltpu.CompilerParams(**cp_kwargs),
    )(p2, e2)

    return out[0, :N].reshape(lead_shape)


if __name__ == "__main__":
    # Module has no learnable parameters (self.var is unused in forward).
    key = jax.random.PRNGKey(0)
    k1, k2 = jax.random.split(key)
    B, S, D = 2, 8, 32
    predicted = jax.random.normal(k1, (B, S, D), dtype=jnp.float32)
    expected = jax.random.normal(k2, (B, S, D), dtype=jnp.float32)

    err = gaussian_log_likelihood(predicted, expected)
    err = jax.block_until_ready(err)

    # correctness check vs plain-JAX reference
    ref = jnp.mean((predicted - expected) ** 2, axis=-1)
    assert err.shape == (B, S)
    assert jnp.allclose(err, ref, atol=1e-5, rtol=1e-5)

    print("KERNEL_OK")
</pallas_src>

<mosaic_0001>
module attributes {stable_mosaic.version = 11 : i64} {
  func.func @_mse_lastdim_kernel(%arg0: i32, %arg1: i32, %arg2: memref<16x32xf32, #tpu.memory_space<vmem>>, %arg3: memref<16x32xf32, #tpu.memory_space<vmem>>, %arg4: memref<1x16xf32, #tpu.memory_space<vmem>>, %arg5: memref<1x16xf32, #tpu.memory_space<vmem>>) attributes {dimension_semantics = [#tpu.dimension_semantics<parallel>, #tpu.dimension_semantics<arbitrary>], iteration_bounds = array<i64: 1, 1>, scalar_prefetch = 0 : i64, scratch_operands = 1 : i64, tpu.core_type = #tpu.core_type<tc>, window_params = [{transform_indices = @transform_0, window_bounds = array<i64: 16, 32>}, {transform_indices = @transform_1, window_bounds = array<i64: 16, 32>}, {transform_indices = @transform_2, window_bounds = array<i64: 1, 16>}]} {
    %c0_i32 = arith.constant 0 : i32
    %0 = arith.cmpi eq, %arg1, %c0_i32 : i32
    %1 = arith.extui %0 : i1 to i32
    %c0_i32_0 = arith.constant 0 : i32
    %2 = arith.cmpi ne, %1, %c0_i32_0 : i32
    scf.if %2 {
      %cst_11 = arith.constant 0.000000e+00 : f32
      %15 = vector.broadcast %cst_11 : f32 to vector<1x16xf32>
      %c0_12 = arith.constant 0 : index
      %c0_13 = arith.constant 0 : index
      %16 = vector.load %arg5[%c0_12, %c0_13] : memref<1x16xf32, #tpu.memory_space<vmem>>, vector<1x16xf32>
      tpu.vector_store %arg5[%c0_12, %c0_13], %15 {strides = array<i32>} : memref<1x16xf32, #tpu.memory_space<vmem>>, vector<1x16xf32>,
    } else {
    }
    %c0 = arith.constant 0 : index
    %c0_1 = arith.constant 0 : index
    %3 = vector.load %arg2[%c0, %c0_1] : memref<16x32xf32, #tpu.memory_space<vmem>>, vector<16x32xf32>
    %c0_2 = arith.constant 0 : index
    %c0_3 = arith.constant 0 : index
    %4 = vector.load %arg3[%c0_2, %c0_3] : memref<16x32xf32, #tpu.memory_space<vmem>>, vector<16x32xf32>
    %5 = arith.subf %3, %4 : vector<16x32xf32>
    %6 = arith.mulf %5, %5 : vector<16x32xf32>
    %cst = arith.constant 1.000000e+00 : f32
    %7 = vector.broadcast %cst : f32 to vector<1x32xf32>
    %cst_4 = arith.constant dense<0.000000e+00> : vector<1x16xf32>
    %8 = tpu.matmul %7, %6, %cst_4 {dimension_numbers = #tpu.dot_dimension_numbers<[1], [1], [0], [0], [0, 0, 1, 0], [], []>} : vector<1x32xf32>, vector<16x32xf32>, vector<1x16xf32> -> vector<1x16xf32>
    %c0_5 = arith.constant 0 : index
    %c0_6 = arith.constant 0 : index
    %9 = vector.load %arg5[%c0_5, %c0_6] : memref<1x16xf32, #tpu.memory_space<vmem>>, vector<1x16xf32>
    %10 = arith.addf %9, %8 : vector<1x16xf32>
    %c0_7 = arith.constant 0 : index
    %c0_8 = arith.constant 0 : index
    %11 = vector.load %arg5[%c0_7, %c0_8] : memref<1x16xf32, #tpu.memory_space<vmem>>, vector<1x16xf32>
    tpu.vector_store %arg5[%c0_7, %c0_8], %10 {strides = array<i32>} : memref<1x16xf32, #tpu.memory_space<vmem>>, vector<1x16xf32>,
    %c0_i32_9 = arith.constant 0 : i32
    %12 = arith.cmpi eq, %arg1, %c0_i32_9 : i32
    %13 = arith.extui %12 : i1 to i32
    %c0_i32_10 = arith.constant 0 : i32
    %14 = arith.cmpi ne, %13, %c0_i32_10 : i32
    scf.if %14 {
      %c0_11 = arith.constant 0 : index
      %c0_12 = arith.constant 0 : index
      %15 = vector.load %arg5[%c0_11, %c0_12] : memref<1x16xf32, #tpu.memory_space<vmem>>, vector<1x16xf32>
      %cst_13 = arith.constant 3.125000e-02 : f32
      %16 = vector.broadcast %cst_13 : f32 to vector<1x16xf32>
      %17 = arith.mulf %15, %16 : vector<1x16xf32>
      %c0_14 = arith.constant 0 : index
      %c0_15 = arith.constant 0 : index
      %18 = vector.load %arg4[%c0_14, %c0_15] : memref<1x16xf32, #tpu.memory_space<vmem>>, vector<1x16xf32>
      tpu.vector_store %arg4[%c0_14, %c0_15], %17 {strides = array<i32>} : memref<1x16xf32, #tpu.memory_space<vmem>>, vector<1x16xf32>,
    } else {
    }
    return
  }
  func.func @transform_0(%arg0: i32, %arg1: i32) -> (i32, i32) {
    %c0_i32 = arith.constant 0 : i32
    return %arg0, %arg1 : i32, i32
  }
  func.func @transform_1(%arg0: i32, %arg1: i32) -> (i32, i32) {
    %c0_i32 = arith.constant 0 : i32
    return %arg0, %arg1 : i32, i32
  }
  func.func @transform_2(%arg0: i32, %arg1: i32) -> (i32, i32) {
    %c0_i32 = arith.constant 0 : i32
    %c0_i32_0 = arith.constant 0 : i32
    return %c0_i32, %arg0 : i32, i32
  }
}

</mosaic_0001>

<bundles_post_ra>
// kernel: tpu_custom_call.1
= control target key start
LH: loop header
LB: loop body
LE: loop exit
PB: predicated region body
PF: predicated region fallthrough
CT: control target
= control target key end

     0   :  { %7 = vsyncpa [#allocation4], 0  ;;  %s282_s0 = inlined_call_operand.hbm [shape: f32[16,32], index: 0, kind: input, shape index: {}]   ;;  %s283_s1 = inlined_call_operand.hbm [shape: f32[16,32], index: 1, kind: input, shape index: {}]   ;;  %s284_s2 = inlined_call_operand.hbm [shape: f32[1,16], index: 2, kind: output, shape index: {}]  }
   0x1   :  { %8 = vsyncpa [#allocation7], 0 }
   0x2   :  { %9 = vsyncpa [#allocation5], 0  ;;  %s247_s9 = smov [#allocation3]  }
   0x3   :  { %s15_s10 = sshll.u32 %s247_s9, 4  ;;  %s16_s10 = int_to_ptr.vmem [resolvable:$true] %s15_s10 }
   0x4   :  { %s189_s11 = scalar_lea.vmem %s16_s10, 256  ;;  %p194_p1 = scmp.lt.s32.totalorder %s16_s10, %s16_s10 }
   0x5   :  { %p190_p0 = scmp.ne.s32.totalorder %s16_s10, %s189_s11  ;;  %p195_p2 = scmp.lt.s32.totalorder %s189_s11, %s189_s11 }
   0x7   :  { %p196_p3 = por %p195_p2, %p194_p1 }
   0x9   :  { %p197_p4 = pnand %p196_p3, %p190_p0 }
   0xb   :  { %200 = shalt.err (!%p197_p4)
}
   0xc   :  { %s248_s12 = smov 128   ;;  %s249_s13 = smov 8  }
   0xd   :  { %21 = dma.hbm_to_vmem [thread:$0]  %s282_s0, 256, %s16_s10, [#allocation4], %s248_s12, %s248_s12, %s249_s13  }
   0xe   :  { %s250_s16 = smov [#allocation6]  }
   0xf   :  { %s27_s17 = sshll.u32 %s250_s16, 4  ;;  %s28_s17 = int_to_ptr.vmem [resolvable:$true] %s27_s17 }
  0x10   :  { %s209_s18 = scalar_lea.vmem %s28_s17, 256  ;;  %p214_p6 = scmp.lt.s32.totalorder %s28_s17, %s28_s17 }
  0x11   :  { %p210_p5 = scmp.ne.s32.totalorder %s28_s17, %s209_s18  ;;  %p215_p7 = scmp.lt.s32.totalorder %s209_s18, %s209_s18 }
  0x13   :  { %p216_p8 = por %p215_p7, %p214_p6 }
  0x15   :  { %p217_p9 = pnand %p216_p8, %p210_p5 }
  0x17   :  { %220 = shalt.err (!%p217_p9)
}
  0x18   :  { %33 = dma.hbm_to_vmem [thread:$0]  %s283_s1, 256, %s28_s17, [#allocation7], %s248_s12, %s248_s12, %s249_s13  }
  0x19   :  { %241 = dma.done.wait [#allocation4], 256  }
  0x1a   :  { %242 = vsyncadd [#allocation4], 4294967040 }
  0x1b   :  { %243 = dma.done.wait [#allocation7], 256  }
  0x1c   :  { %244 = vsyncadd [#allocation7], 4294967040  ;;  %v251_v0 = vmov 0.0   ;;  %vm252_vm0 = vmmov 0   ;;  %vm44_vm1 = vcmask 122880   ;;  %v47_v1 = vld [vmem:[#allocation3 + $0x8] sm:$0xff] }
  0x1d   :  { %166 = vmatprep.subr.mxu0 %v251_v0  ;;  %170 = vmatprep.mubr.msk.f32.mxu0 %vm252_vm0, %v251_v0  ;;  %45 = vst.msk [vmem:[#allocation2] sm:$0x1] %vm44_vm1, %v251_v0  ;;  %v49_v2 = vld [vmem:[#allocation6 + $0x8] sm:$0xff]  ;;  %v46_v3 = vld [vmem:[#allocation3] sm:$0xff]  ;;  %v48_v5 = vld [vmem:[#allocation6] sm:$0xff]  ;;  %vm54_vm2 = vcmask 261120  }
  0x1e   :  { %v51_v4 = vsub.f32 %v47_v1, %v49_v2  ;;  %v50_v6 = vsub.f32 %v46_v3, %v48_v5  ;;  %v253_v9 = vmov 1.0   ;;  %s254_s0 = smov [#allocation8]  }
  0x1f   :  { %s150_s1 = sshll.u32 %s254_s0, 4  ;;  %s151_s1 = int_to_ptr.vmem [resolvable:$true] %s150_s1 }
  0x20   :  { %v53_v7 = vmul.f32 %v51_v4, %v51_v4  ;;  %v52_v8 = vmul.f32 %v50_v6, %v50_v6  ;;  %s221_s21 = scalar_lea.vmem %s151_s1, 16  ;;  %s225_s22 = scalar_lea.vmem %s151_s1, 32 }
  0x21   :  { %p222_p10 = scmp.ne.s32.totalorder %s151_s1, %s221_s21  ;;  %p226_p11 = scmp.lt.s32.totalorder %s151_s1, %s151_s1 }
  0x22   :  { %167 = vmatpush3.xpose.msk.msra.mxu0 %vm54_vm2, %v53_v7  ;;  %p227_p12 = scmp.lt.s32.totalorder %s225_s22, %s221_s21 }
  0x23   :  { %168 = vmatprep.subr.mxu0 %v251_v0 }
  0x24   :  { %v134_v10 = vld [vmem:[#allocation2] sm:$0x1]  ;;  %p228_p13 = por %p227_p12, %p226_p11 }
  0x26   :  { %169 = vmatpush3.xpose.msk.msra.mxu0 %vm54_vm2, %v52_v8  ;;  %p229_p0 = pnand %p228_p13, %p222_p10 }
  0x29   :  { %171 = vmatmul.mubr.msk.f32.vlgmr.msra.gmra.mxu0 %vm54_vm2, %v253_v9 }
  0xe9   :  { %v130_v11 = vpop.f32.mrf.mxu0 }
  0xea   :  { %v135_v12 = vadd.f32 %v134_v10, %v130_v11 }
  0xeb   :  { %v172_v13 = vpop.f32.mrf.mxu0 }
  0xec   :  { %137 = vst.msk [vmem:[#allocation2] sm:$0x1] %vm44_vm1, %v135_v12 }
  0xf3   :  { %v141_v14 = vld [vmem:[#allocation2] sm:$0x1] }
  0xf4   :  { %v142_v15 = vmul.f32 0.03125, %v141_v14 }
  0xf6   :  { %143 = vst.msk [vmem:[#allocation8] sm:$0x1] %vm44_vm1, %v142_v15 }
  0xf7   :  { %232 = shalt.err (!%p229_p0)
}
  0xf8   :  { %153 = dma.vmem_to_hbm [thread:$0]  %s151_s1, 16, %s284_s2, [#allocation5]  }
  0xf9   :  { %245 = dma.done.wait [#allocation5], 16  }
  0xfa   :  { %246 = vsyncadd [#allocation5], 4294967280 }
  0xfb   :  { %157 = vsyncpa [#allocation4], 1 }
  0xfc   :  { %158 = vsyncpa [#allocation7], 1 }
  0xfd   :  { %159 = vsyncpa [#allocation5], 1 }

</bundles_post_ra>
